<compile_context>
chip_gen: v5e
topology: v5e:2x2
jax: 0.10.0
libtpu: 0.0.40
codegen_flags: <defaults>
</compile_context>

<pallas_src>
import jax
import jax.numpy as jnp
import numpy as np
from jax.experimental import pallas as pl
from jax.experimental.pallas import tpu as pltpu


def _attn_filtration_kernel(sim_ref, w_ref, scalars_ref, out_ref):
    # sim_ref:     (BT, L, D)  VMEM  (input dtype, possibly bf16)
    # w_ref:       (1, D)      VMEM  (attn_sim_w weight as a row)
    # scalars_ref: (3,)        SMEM  [linear_bias, bn_scale, bn_shift]
    # out_ref:     (BT, 1, D)  VMEM  float32
    sim = sim_ref[...].astype(jnp.float32)                    # (BT, L, D)
    w = w_ref[...].astype(jnp.float32)                        # (1, D)
    bias = scalars_ref[0]
    bn_scale = scalars_ref[1]
    bn_shift = scalars_ref[2]

    # Linear(sim_dim, 1): VPU multiply + lane reduction.
    scores = jnp.sum(sim * w, axis=-1, keepdims=True) + bias  # (BT, L, 1)

    # BatchNorm1d(1) folded into affine (running stats) + sigmoid gate.
    gate = 1.0 / (1.0 + jnp.exp(-(scores * bn_scale + bn_shift)))  # (BT, L, 1)

    # l1norm over the L (alignment) axis.
    denom = jnp.sum(jnp.abs(gate), axis=1, keepdims=True) + 1e-8   # (BT, 1, 1)
    attn = gate / denom                                            # (BT, L, 1)

    # sim_saf = attn @ sim_emb : contraction over L per batch element.
    saf = jnp.sum(attn * sim, axis=1, keepdims=True)               # (BT, 1, D)

    # l2norm over the feature axis.
    norm = jnp.sqrt(jnp.sum(saf * saf, axis=-1, keepdims=True)) + 1e-8
    out_ref[...] = (saf / norm).astype(out_ref.dtype)


def attention_filtration_forward(sim_emb, w, b, bn_gamma, bn_beta,
                                 bn_mean, bn_var, *, bn_eps=1e-5,
                                 block_b=None):
    """sim_emb: (B, L, D); w: (D,) Linear(sim_dim,1) weight; b / BN params: scalars."""
    B, L, D = sim_emb.shape

    if block_b is None:
        block_b = min(B, 128)
        if B >= 2:                        # keep >=2 grid steps (v7x: 2 TensorCores)
            block_b = max(1, min(block_b, pl.cdiv(B, 2)))
    bt = int(block_b)
    grid = (pl.cdiv(B, bt),)

    # Fold BatchNorm (inference / running-stats) into one affine scale/shift.
    bn_scale = jnp.asarray(bn_gamma, jnp.float32) / jnp.sqrt(
        jnp.asarray(bn_var, jnp.float32) + bn_eps)
    bn_shift = jnp.asarray(bn_beta, jnp.float32) - jnp.asarray(bn_mean, jnp.float32) * bn_scale
    scalars = jnp.stack([jnp.asarray(b, jnp.float32), bn_scale, bn_shift])   # (3,)

    w_row = jnp.asarray(w, jnp.float32).reshape(1, D)

    out = pl.pallas_call(
        _attn_filtration_kernel,
        out_shape=jax.ShapeDtypeStruct((B, 1, D), jnp.float32),
        grid_spec=pltpu.PrefetchScalarGridSpec(
            num_scalar_prefetch=0,
            grid=grid,
            in_specs=[
                pl.BlockSpec((bt, L, D), lambda i: (i, 0, 0)),          # sim_emb block
                pl.BlockSpec((1, D), lambda i: (0, 0)),                 # weight row (resident)
                pl.BlockSpec(memory_space=pltpu.MemorySpace.SMEM),      # scalars in SMEM
            ],
            out_specs=pl.BlockSpec((bt, 1, D), lambda i: (i, 0, 0)),
        ),
        compiler_params=pltpu.CompilerParams(
            dimension_semantics=("parallel",)),
    )(sim_emb, w_row, scalars)
    return out.reshape(B, D)


def init_params(key, sim_dim):
    # Mirrors AttentionFiltration.init_weights: Linear ~ U(-r, r), bias 0,
    # BN gamma=1, beta=0, running_mean=0, running_var=1.
    r = np.sqrt(6.0) / np.sqrt(sim_dim + 1)
    w = jax.random.uniform(key, (sim_dim,), jnp.float32, -r, r)
    b = jnp.float32(0.0)
    bn_gamma = jnp.float32(1.0)
    bn_beta = jnp.float32(0.0)
    bn_mean = jnp.float32(0.0)
    bn_var = jnp.float32(1.0)
    return w, b, bn_gamma, bn_beta, bn_mean, bn_var


def attention_filtration_reference(sim_emb, w, b, bn_gamma, bn_beta,
                                   bn_mean, bn_var, bn_eps=1e-5):
    # Pure-JAX reference (elementwise formulation, f32 math).
    x = sim_emb.astype(jnp.float32)
    w = jnp.asarray(w, jnp.float32)
    scores = jnp.sum(x * w[None, None, :], axis=-1, keepdims=True) + b      # (B, L, 1)
    bn = (scores - bn_mean) / jnp.sqrt(bn_var + bn_eps) * bn_gamma + bn_beta
    gate = 1.0 / (1.0 + jnp.exp(-bn))
    attn = gate / (jnp.sum(jnp.abs(gate), axis=1, keepdims=True) + 1e-8)    # l1norm over L
    saf = jnp.sum(attn * x, axis=1)                                         # (B, D)
    norm = jnp.sqrt(jnp.sum(saf ** 2, axis=-1, keepdims=True)) + 1e-8       # l2norm
    return saf / norm


if __name__ == "__main__":
    B, L, D = 8, 8, 32   # (batch, L+1 alignments, sim_dim) -- small test sizes
    key = jax.random.PRNGKey(0)
    k_sim, k_w = jax.random.split(key)

    sim_emb = jax.random.normal(k_sim, (B, L, D), jnp.float32)
    params = init_params(k_w, D)

    # f32 path: 2 grid steps of BT=4 batch elements each.
    out = attention_filtration_forward(sim_emb, *params, block_b=4)
    out = jax.block_until_ready(out)
    ref = attention_filtration_reference(sim_emb, *params)
    np.testing.assert_allclose(np.asarray(out), np.asarray(ref), rtol=1e-5, atol=1e-5)

    # bf16 input stream (halved HBM DMA volume); in-kernel math stays f32.
    sim_bf16 = sim_emb.astype(jnp.bfloat16)
    out_bf = jax.block_until_ready(
        attention_filtration_forward(sim_bf16, *params, block_b=4))
    ref_bf = attention_filtration_reference(sim_bf16, *params)
    np.testing.assert_allclose(np.asarray(out_bf), np.asarray(ref_bf),
                               rtol=1e-5, atol=1e-5)

    print("KERNEL_OK")
</pallas_src>

<mosaic_0001>
module attributes {stable_mosaic.version = 11 : i64} {
  func.func @_attn_filtration_kernel(%arg0: i32, %arg1: memref<4x8x32xf32, #tpu.memory_space<vmem>>, %arg2: memref<1x32xf32, #tpu.memory_space<vmem>>, %arg3: memref<3xf32, #tpu.memory_space<smem>>, %arg4: memref<4x1x32xf32, #tpu.memory_space<vmem>>) attributes {dimension_semantics = [#tpu.dimension_semantics<parallel>], iteration_bounds = array<i64: 2>, scalar_prefetch = 0 : i64, scratch_operands = 0 : i64, tpu.core_type = #tpu.core_type<tc>, window_params = [{transform_indices = @transform_0, window_bounds = array<i64: 4, 8, 32>}, {pipeline_mode = #tpu.pipeline_mode<synchronous>, transform_indices = @transform_1, window_bounds = array<i64: 1, 32>}, {transform_indices = @transform_2, window_bounds = array<i64: 3>}, {transform_indices = @transform_3, window_bounds = array<i64: 4, 1, 32>}]} {
    %c0 = arith.constant 0 : index
    %c0_0 = arith.constant 0 : index
    %c0_1 = arith.constant 0 : index
    %0 = vector.load %arg1[%c0, %c0_0, %c0_1] : memref<4x8x32xf32, #tpu.memory_space<vmem>>, vector<4x8x32xf32>
    %c0_2 = arith.constant 0 : index
    %c0_3 = arith.constant 0 : index
    %1 = vector.load %arg2[%c0_2, %c0_3] : memref<1x32xf32, #tpu.memory_space<vmem>>, vector<1x32xf32>
    %c0_4 = arith.constant 0 : index
    %2 = memref.load %arg3[%c0_4] : memref<3xf32, #tpu.memory_space<smem>>
    %c1 = arith.constant 1 : index
    %3 = memref.load %arg3[%c1] : memref<3xf32, #tpu.memory_space<smem>>
    %c2 = arith.constant 2 : index
    %4 = memref.load %arg3[%c2] : memref<3xf32, #tpu.memory_space<smem>>
    %5 = vector.shape_cast %1 : vector<1x32xf32> to vector<1x1x32xf32>
    %6 = vector.broadcast %5 : vector<1x1x32xf32> to vector<4x8x32xf32>
    %7 = arith.mulf %0, %6 : vector<4x8x32xf32>
    %cst = arith.constant dense<0.000000e+00> : vector<4x8xf32>
    %8 = vector.multi_reduction <add>, %7, %cst [2] : vector<4x8x32xf32> to vector<4x8xf32>
    %9 = vector.shape_cast %8 : vector<4x8xf32> to vector<4x8x1xf32>
    %10 = vector.broadcast %2 : f32 to vector<4x8x1xf32>
    %11 = arith.addf %9, %10 : vector<4x8x1xf32>
    %12 = vector.broadcast %3 : f32 to vector<4x8x1xf32>
    %13 = arith.mulf %11, %12 : vector<4x8x1xf32>
    %14 = vector.broadcast %4 : f32 to vector<4x8x1xf32>
    %15 = arith.addf %13, %14 : vector<4x8x1xf32>
    %cst_5 = arith.constant 0.000000e+00 : f32
    %16 = vector.broadcast %cst_5 : f32 to vector<4x8x1xf32>
    %17 = arith.subf %16, %15 : vector<4x8x1xf32>
    %18 = math.exp %17 : vector<4x8x1xf32>
    %cst_6 = arith.constant 1.000000e+00 : f32
    %19 = vector.broadcast %cst_6 : f32 to vector<4x8x1xf32>
    %20 = arith.addf %19, %18 : vector<4x8x1xf32>
    %cst_7 = arith.constant 1.000000e+00 : f32
    %21 = vector.broadcast %cst_7 : f32 to vector<4x8x1xf32>
    %22 = arith.divf %21, %20 : vector<4x8x1xf32>
    %23 = math.absf %22 : vector<4x8x1xf32>
    %cst_8 = arith.constant dense<0.000000e+00> : vector<4x1xf32>
    %24 = vector.multi_reduction <add>, %23, %cst_8 [1] : vector<4x8x1xf32> to vector<4x1xf32>
    %25 = vector.shape_cast %24 : vector<4x1xf32> to vector<4x1x1xf32>
    %cst_9 = arith.constant 9.99999993E-9 : f32
    %26 = vector.broadcast %cst_9 : f32 to vector<4x1x1xf32>
    %27 = arith.addf %25, %26 : vector<4x1x1xf32>
    %28 = vector.broadcast %27 : vector<4x1x1xf32> to vector<4x8x1xf32>
    %29 = arith.divf %22, %28 : vector<4x8x1xf32>
    %30 = vector.broadcast %29 : vector<4x8x1xf32> to vector<4x8x32xf32>
    %31 = arith.mulf %30, %0 : vector<4x8x32xf32>
    %cst_10 = arith.constant dense<0.000000e+00> : vector<4x32xf32>
    %32 = vector.multi_reduction <add>, %31, %cst_10 [1] : vector<4x8x32xf32> to vector<4x32xf32>
    %33 = vector.shape_cast %32 : vector<4x32xf32> to vector<4x1x32xf32>
    %34 = arith.mulf %33, %33 : vector<4x1x32xf32>
    %cst_11 = arith.constant dense<0.000000e+00> : vector<4x1xf32>
    %35 = vector.multi_reduction <add>, %34, %cst_11 [2] : vector<4x1x32xf32> to vector<4x1xf32>
    %36 = vector.shape_cast %35 : vector<4x1xf32> to vector<4x1x1xf32>
    %37 = math.sqrt %36 : vector<4x1x1xf32>
    %cst_12 = arith.constant 9.99999993E-9 : f32
    %38 = vector.broadcast %cst_12 : f32 to vector<4x1x1xf32>
    %39 = arith.addf %37, %38 : vector<4x1x1xf32>
    %40 = vector.broadcast %39 : vector<4x1x1xf32> to vector<4x1x32xf32>
    %41 = arith.divf %33, %40 : vector<4x1x32xf32>
    %c0_13 = arith.constant 0 : index
    %c0_14 = arith.constant 0 : index
    %c0_15 = arith.constant 0 : index
    %42 = vector.load %arg4[%c0_13, %c0_14, %c0_15] : memref<4x1x32xf32, #tpu.memory_space<vmem>>, vector<4x1x32xf32>
    tpu.vector_store %arg4[%c0_13, %c0_14, %c0_15], %41 {strides = array<i32>} : memref<4x1x32xf32, #tpu.memory_space<vmem>>, vector<4x1x32xf32>,
    return
  }
  func.func @transform_0(%arg0: i32) -> (i32, i32, i32) {
    %c0_i32 = arith.constant 0 : i32
    %c0_i32_0 = arith.constant 0 : i32
    %c0_i32_1 = arith.constant 0 : i32
    return %arg0, %c0_i32, %c0_i32_0 : i32, i32, i32
  }
  func.func @transform_1(%arg0: i32) -> (i32, i32) {
    %c0_i32 = arith.constant 0 : i32
    %c0_i32_0 = arith.constant 0 : i32
    %c0_i32_1 = arith.constant 0 : i32
    return %c0_i32, %c0_i32_0 : i32, i32
  }
  func.func @transform_2(%arg0: i32) -> i32 {
    %c0_i32 = arith.constant 0 : i32
    %c0_i32_0 = arith.constant 0 : i32
    return %c0_i32 : i32
  }
  func.func @transform_3(%arg0: i32) -> (i32, i32, i32) {
    %c0_i32 = arith.constant 0 : i32
    %c0_i32_0 = arith.constant 0 : i32
    %c0_i32_1 = arith.constant 0 : i32
    return %arg0, %c0_i32, %c0_i32_0 : i32, i32, i32
  }
}

</mosaic_0001>

<bundles_post_ra>
// kernel: tpu_custom_call.1
= control target key start
LH: loop header
LB: loop body
LE: loop exit
PB: predicated region body
PF: predicated region fallthrough
CT: control target
= control target key end

     0   :  { %8 = vsyncpa [#allocation3], 0  ;;  %s1249_s0 = inlined_call_operand.hbm [shape: f32[8,8,32], index: 0, kind: input, shape index: {}]   ;;  %s1250_s1 = inlined_call_operand.hbm [shape: f32[1,32], index: 1, kind: input, shape index: {}]   ;;  %s1251_s2 = inlined_call_operand.vmem [shape: f32[3], index: 2, kind: input, shape index: {}]   ;;  %s1252_s3 = inlined_call_operand.hbm [shape: f32[8,1,32], index: 3, kind: output, shape index: {}]  }
   0x1   :  { %10 = vsyncpa [#allocation3 + $0x1], 0 }
   0x2   :  { %11 = vsyncpa [#allocation7], 0 }
   0x3   :  { %12 = vsyncpa [#allocation5], 0 }
   0x4   :  { %13 = vsyncpa [#allocation4], 0 }
   0x5   :  { %15 = vsyncpa [#allocation4 + $0x1], 0  ;;  %s1017_s12 = smov 0   ;;  %s1019_s13 = smov 0  }
   0x6   :  { %s1021_s14 = smov 0   ;;  %s1023_s15 = smov 0  }
   0x7 LB: > { %s1038_s16 = sadd.s32 4294967295, %s989_s15   ;;  %s708_s17 = sadd.s32 4294967294, %s989_s15   ;;  %s989_s15 = sphi %s1023_s15, %s1263_s15   ;;  %s985_s14 = sphi %s1021_s14, %s1262_s14   ;;  %s981_s13 = sphi %s1019_s13, %s1261_s13   ;;  %s977_s12 = sphi %s1017_s12, %s1260_s12  }
   0x8   : > { %s1042_s18 = sadd.s32 1, %s989_s15   ;;  %s28_s19 = sadd.s32 1, %s985_s14 }
   0x9   : > { %s25_s20 = ssub.s32 %s989_s15, %s1042_s18  ;;  %p35_p0 = scmp.ne.s32.totalorder %s985_s14, %s981_s13 }
   0xa   : > { %p26_p1 = scmp.eq.s32.totalorder %s25_s20, 0  ;;  %p36_p2 = scmp.eq.s32.totalorder %s989_s15, 0 }
   0xb   : > { %p41_p3 = scmp.ne.s32.totalorder %s981_s13, %s977_s12  ;;  %p42_p4 = scmp.eq.s32.totalorder %s1038_s16, 0 }
   0xc   : > { %s1054_s21 = scalar_select %p26_p1, %s985_s14, %s28_s19  }
   0xd   : > { %p1056_p5 = por %p36_p2, %p35_p0  ;;  %p1062_p6 = por %p42_p4, %p41_p3 }
   0xe   : > { %p107_p7 = scmp.eq.s32.totalorder %s1038_s16, 1  ;;  %p113_p8 = scmp.eq.s32.totalorder %s708_s17, 1 }
   0xf   : > { %p709_p9 = scmp.ge.s32.totalorder %s989_s15, 1  ;;  %p120_p10 = scmp.lt.s32.totalorder %s989_s15, 3 }
  0x10   : > { %p1069_p11 = por %p107_p7, %p35_p0  ;;  %p1073_p12 = por %p113_p8, %p41_p3 }
  0x11   : > { %p1077_p13 = pnand %p709_p9, %p120_p10  ;;  %s132_s29 = sshll.u32 %s1250_s1, 4  ;;  %s133_s29 = int_to_ptr.hbm [resolvable:$true] %s132_s29 }
  0x12   : > { %s991_s30 = smov [#allocation6]   ;;  %p757_p3 = scmp.lt.s32.totalorder %s989_s15, 2 }
  0x13   : > { %p740_p1 = pneg %p1077_p13  ;;  %s134_s4 = sshll.u32 %s991_s30, 4  ;;  %s135_s4 = int_to_ptr.vmem [resolvable:$true] %s134_s4 }
  0x14   : > { %s144_s7 = sshll.u32 %s1251_s2, 4  ;;  %p1095_p7 = pnand %p757_p3, %p1056_p5  ;;  %s145_s7 = int_to_ptr.vmem [resolvable:$true] %s144_s7 }
  0x15   : > { %p741_p2 = pnand %p740_p1, %p42_p4  ;;  %s992_s9 = smov [#allocation8]  }
  0x16   : > { %s155_s10 = sand.u32 1, %s985_s14   ;;  %s727_s17 = sshll.u32 %s989_s15, 5 }
  0x17   : > { %743 = dma.hbm_to_vmem [thread:$0]  (!%p741_p2), %s133_s29, 16, %s135_s4, [#allocation7]  }
  0x18   : > { %746 = dma.vmem_to_smem (!%p741_p2), %s145_s7, 16, %s992_s9, [#allocation5]  }
  0x19   : > { %s713_s11 = sshll.u32 %s155_s10, 5  ;;  %s164_s27 = scalar_lea.hbm %s1249_s0, %s727_s17 }
  0x1a   : > { %s159_s28 = scalar_lea.vmem [#allocation2], %s713_s11  ;;  %s165_s5 = sshll.u32 %s164_s27, 4  ;;  %s166_s5 = int_to_ptr.hbm [resolvable:$true] %s165_s5 }
  0x1b   : > { %s167_s30 = sshll.u32 %s159_s28, 4  ;;  %s156_s22 = scalar_lea.sflag [#allocation3], %s155_s10  ;;  %s168_s30 = int_to_ptr.vmem [resolvable:$true] %s167_s30 }
  0x1c   : > { %s885_s29 = sshra.s32 %s166_s5, 4  ;;  %p889_p8 = pneg %p1095_p7  ;;  %s886_s29 = int_to_ptr.hbm [resolvable:$true] %s885_s29 }
  0x1d   : > { %s887_s4 = scalar_lea.hbm %s886_s29, 32  ;;  %s892_s9 = scalar_lea.hbm %s1249_s0, 64 }
  0x1e   : > { %p888_p5 = scmp.ne.s32.totalorder %s886_s29, %s887_s4  ;;  %p893_p1 = scmp.lt.s32.totalorder %s886_s29, %s1249_s0 }
  0x1f   : > { %p894_p2 = scmp.lt.s32.totalorder %s892_s9, %s887_s4 }
  0x20   : > { %p890_p9 = pnand %p889_p8, %p888_p5 }
  0x21   : > { %p895_p3 = por %p894_p2, %p893_p1 }
  0x22   : > { %p891_p10 = pneg %p890_p9 }
  0x24   : > { %p896_p0 = pnand %p895_p3, %p891_p10 }
  0x26   : > { %899 = shalt.err (!%p896_p0)
}
  0x27   : > { %s993_s10 = smov 128   ;;  %s994_s11 = smov 8  }
  0x28   : > { %750 = dma.hbm_to_vmem [thread:$0]  (!%p1095_p7), %s166_s5, 512, %s168_s30, %s156_s22, %s993_s10, %s993_s10, %s994_s11  }
  0x29   : > { %179 = sbr.rel (%p1077_p13) target bundleno = 435 (0x1b3), region = 32  ;;  %s1117_s20 = sand.u32 (!%p1077_p13), 1, %s981_s13  }
  0x2a   : > { %s717_s27 = sshll.u32 (!%p1077_p13), %s1117_s20, 5  ;;  %s182_s28 = scalar_lea.sflag (!%p1077_p13), [#allocation3], %s1117_s20 }
  0x2b   : > { %s185_s29 = scalar_lea.vmem (!%p1077_p13), [#allocation2], %s717_s27 }
  0x2e   : > { %960 = dma.done.wait (%p1062_p6), %s182_s28, 512  }
  0x2f   : > { %962 = vsyncadd (%p1062_p6), %s182_s28, 4294966784 }
  0x30   : > { %964 = dma.done.wait (%p42_p4), [#allocation7], 16  }
  0x31   : > { %966 = vsyncadd (%p42_p4), [#allocation7], 4294967280 }
  0x32   : > { %968 = dma.done.wait (%p42_p4), [#allocation5], 16  }
  0x33   : > { %970 = vsyncadd (%p42_p4), [#allocation5], 4294967280 }
  0x34   : > { %201 = sfence }
  0x35   : > { %v1133_v0 = vld [vmem:[%s185_s29 + $0x10] sm:$0xff]  ;;  %v799_v1 = vld [vmem:[#allocation6] ss:$0 sm:$0xff]  ;;  %vm237_vm0 = vcmask 261120   ;;  %v1139_v5 = vld [vmem:[%s185_s29 + $0x18] sm:$0xff]  ;;  %s227_s23 = sld [smem:[#allocation8]] }
  0x36   : > { %v1135_v2 = vld [vmem:[%s185_s29] sm:$0xff]  ;;  %v235_v3 = vmul.f32 %v799_v1, %v1133_v0  ;;  %v1141_v6 = vld [vmem:[%s185_s29 + $0x8] sm:$0xff]  ;;  %v236_v9 = vmul.f32 %v799_v1, %v1139_v5  ;;  %s721_s26 = sld [smem:[#allocation8 + $0x1]]  ;;  %s720_s30 = sshll.u32 %s1117_s20, 2 }
  0x37   : > { %v233_v4 = vmul.f32 %v799_v1, %v1135_v2  ;;  %v234_v10 = vmul.f32 %v799_v1, %v1141_v6  ;;  %s722_s8 = sld [smem:[#allocation8 + $0x2]]  ;;  %s1203_s5 = scalar_lea.vmem [#allocation9], %s720_s30 }
  0x38   : > { %v244_v7 = vsel %vm237_vm0, %v235_v3, 0.0  ;;  %v247_v11 = vsel %vm237_vm0, %v236_v9, 0.0  ;;  %s724_s22 = sshll.u32 %s1038_s16, 2  ;;  %s610_s16 = sshll.u32 %s1203_s5, 4  ;;  %s611_s16 = int_to_ptr.vmem [resolvable:$true] %s610_s16 }
  0x39   : > { %v238_v8 = vsel %vm237_vm0, %v233_v4, 0.0  ;;  %245 = vadd.xlane.f32.xlu1 %v244_v7  ;;  %v241_v12 = vsel %vm237_vm0, %v234_v10, 0.0  ;;  %s609_s7 = scalar_lea.hbm %s1252_s3, %s724_s22  ;;  %s599_s19 = scalar_lea.sflag [#allocation4], %s1117_s20 }
  0x3a   : > { %239 = vadd.xlane.f32.xlu0 %v238_v8  ;;  %s612_s9 = sshll.u32 %s609_s7, 4  ;;  %s935_s28 = scalar_lea.hbm %s1252_s3, 8  ;;  %s613_s9 = int_to_ptr.hbm [resolvable:$true] %s612_s9 }
  0x3b   : > { %v250_v13 = vstv %s227_s23  ;;  %s929_s17 = sshra.s32 %s613_s9, 4  ;;  %s930_s17 = int_to_ptr.hbm [resolvable:$true] %s929_s17 }
  0x3c   : > { %v255_v14 = vstv %s721_s26  ;;  %s931_s10 = scalar_lea.hbm %s930_s17, 4  ;;  %p936_p0 = scmp.lt.s32.totalorder %s930_s17, %s1252_s3 }
  0x3d   : > { %v260_v19 = vstv %s722_s8  ;;  %p932_p4 = scmp.ne.s32.totalorder %s930_s17, %s931_s10  ;;  %p937_p7 = scmp.lt.s32.totalorder %s935_s28, %s931_s10 }
  0x3f   : > { %p933_p6 = pnand %p932_p4, %p1069_p11  ;;  %p938_p5 = por %p937_p7, %p936_p0 }
  0x41   : > { %248 = vadd.xlane.f32.xlu1 %v247_v11  ;;  %p934_p13 = pneg %p933_p6 }
  0x42   : > { %242 = vadd.xlane.f32.xlu0 %v241_v12 }
  0x43   : > { %p939_p8 = pnand %p938_p5, %p934_p13 }
  0xac   : > { %v246_v15 = vpop.xlane.xlu1 %245 }
  0xad   : > { %v240_v16 = vpop.xlane.xlu0 %239  ;;  %v253_v17 = vadd.f32 %v250_v13, %v246_v15 }
  0xae   : > { %v251_v18 = vadd.f32 %v250_v13, %v240_v16 }
  0xaf   : > { %v258_v20 = vmul.f32 %v255_v14, %v253_v17 }
  0xb0   : > { %v256_v21 = vmul.f32 %v255_v14, %v251_v18 }
  0xb1   : > { %v263_v22 = vadd.f32 %v260_v19, %v258_v20 }
  0xb2   : > { %v261_v23 = vadd.f32 %v260_v19, %v256_v21 }
  0xb3   : > { %v267_v24 = vsub.f32 0.0, %v263_v22 }
  0xb4   : > { %v265_v25 = vsub.f32 0.0, %v261_v23  ;;  %v249_v26 = vpop.xlane.xlu1 %248 }
  0xb5   : > { %v243_v27 = vpop.xlane.xlu0 %242  ;;  %v273_v28 = vmul.f32 1.442695, %v267_v24  ;;  %v254_v30 = vadd.f32 %v250_v13, %v249_v26 }
  0xb6   : > { %v269_v29 = vmul.f32 1.442695, %v265_v25  ;;  %v252_v31 = vadd.f32 %v250_v13, %v243_v27 }
  0xb7   : > { %800 = vpow2.f32 %v273_v28  ;;  %v259_v32 = vmul.f32 %v255_v14, %v254_v30 }
  0xb8   : > { %v257_v33 = vmul.f32 %v255_v14, %v252_v31  ;;  %802 = vpow2.f32 %v269_v29 }
  0xb9   : > { %v264_v34 = vadd.f32 %v260_v19, %v259_v32 }
  0xba   : > { %v262_v35 = vadd.f32 %v260_v19, %v257_v33 }
  0xbb   : > { %v268_v36 = vsub.f32 0.0, %v264_v34 }
  0xbc   : > { %v266_v37 = vsub.f32 0.0, %v262_v35 }
  0xbd   : > { %v801_v38 = vpop.eup %800  ;;  %v275_v39 = vmul.f32 1.442695, %v268_v36 }
  0xbe   : > { %v803_v40 = vpop.eup %802  ;;  %v279_v41 = vadd.f32 1.0, %v801_v38  ;;  %v271_v42 = vmul.f32 1.442695, %v266_v37 }
  0xbf   : > { %v277_v43 = vadd.f32 1.0, %v803_v40  ;;  %804 = vpow2.f32 %v275_v39 }
  0xc0   : > { %806 = vrcp.f32 %v279_v41  ;;  %v320_v54 = vand.u32 2147483647, %v279_v41  ;;  %v322_v55 = vand.u32 2147483648, %v279_v41  ;;  %vm316_vm3 = vweird.f32 %v279_v41 }
  0xc1   : > { %808 = vrcp.f32 %v277_v43  ;;  %v292_v57 = vand.u32 2147483648, %v277_v43  ;;  %v290_v59 = vand.u32 2147483647, %v277_v43  ;;  %vm286_vm5 = vweird.f32 %v277_v43 }
  0xc2   : > { %810 = vpow2.f32 %v271_v42  ;;  %v323_v62 = vor.u32 1.1754944e-38, %v322_v55  ;;  %vm321_vm6 = vcmp.eq.f32.partialorder %v320_v54, 8.507059e+37 }
  0xc3   : > { %v293_v4 = vor.u32 1.1754944e-38, %v292_v57  ;;  %vm291_vm8 = vcmp.eq.f32.partialorder %v290_v59, 8.507059e+37 }
  0xc5   : > { %v805_v44 = vpop.eup %804 }
  0xc6   : > { %v807_v45 = vpop.eup %806  ;;  %v280_v46 = vadd.f32 1.0, %v805_v44 }
  0xc7   : > { %v809_v47 = vpop.eup %808  ;;  %v312_v48 = vmul.f32 %v807_v45, %v279_v41  ;;  %vm317_vm1 = vweird.f32 %v807_v45 }
  0xc8   : > { %v811_v49 = vpop.eup %810  ;;  %v282_v50 = vmul.f32 %v809_v47, %v277_v43  ;;  %812 = vrcp.f32 %v280_v46  ;;  %vm287_vm2 = vweird.f32 %v809_v47  ;;  %vm318_vm4 = vmor %vm316_vm3, %vm317_vm1  ;;  %v337_v13 = vand.u32 2147483648, %v280_v46 }
  0xc9   : > { %v313_v51 = vsub.f32 1.0, %v312_v48  ;;  %v1149_v52 = vadd.f32 1.0, %v811_v49  ;;  %vm288_vm7 = vmor %vm286_vm5, %vm287_vm2  ;;  %v335_v18 = vand.u32 2147483647, %v280_v46  ;;  %vm331_vm10 = vweird.f32 %v280_v46 }
  0xca   : > { %v283_v53 = vsub.f32 1.0, %v282_v50  ;;  %v338_v23 = vor.u32 1.1754944e-38, %v337_v13 }
  0xcb   : > { %v314_v56 = vmul.f32 %v807_v45, %v313_v51  ;;  %814 = vrcp.f32 %v1149_v52  ;;  %v307_v24 = vand.u32 2147483648, %v1149_v52  ;;  %v305_v27 = vand.u32 2147483647, %v1149_v52 }
  0xcc   : > { %v284_v58 = vmul.f32 %v809_v47, %v283_v53  ;;  %vm336_vm13 = vcmp.eq.f32.partialorder %v335_v18, 8.507059e+37  ;;  %vm301_vm14 = vweird.f32 %v1149_v52 }
  0xcd   : > { %v315_v60 = vadd.f32 %v807_v45, %v314_v56  ;;  %v308_v35 = vor.u32 1.1754944e-38, %v307_v24  ;;  %vm306_vm1 = vcmp.eq.f32.partialorder %v305_v27, 8.507059e+37 }
  0xce   : > { %v813_v61 = vpop.eup %812  ;;  %v285_v63 = vadd.f32 %v809_v47, %v284_v58 }
  0xcf   : > { %v327_v1 = vmul.f32 %v813_v61, %v280_v46  ;;  %v319_v3 = vsel %vm318_vm4, %v807_v45, %v315_v60  ;;  %vm332_vm9 = vweird.f32 %v813_v61 }
  0xd0   : > { %v1152_v7 = vsel %vm321_vm6, %v323_v62, %v319_v3  ;;  %v289_v8 = vsel %vm288_vm7, %v809_v47, %v285_v63  ;;  %vm333_vm11 = vmor %vm331_vm10, %vm332_vm9 }
  0xd1   : > { %v815_v9 = vpop.eup %814  ;;  %v328_v10 = vsub.f32 1.0, %v327_v1  ;;  %v343_v11 = vand.u32 2147483647, %v1152_v7  ;;  %v1155_v12 = vsel %vm291_vm8, %v293_v4, %v289_v8 }
  0xd2   : > { %v297_v14 = vmul.f32 %v815_v9, %v1149_v52  ;;  %v341_v15 = vand.u32 2147483647, %v1155_v12  ;;  %vm302_vm12 = vweird.f32 %v815_v9 }
  0xd3   : > { %v329_v16 = vmul.f32 %v813_v61, %v328_v10  ;;  %v357_v17 = vrot.slane %v343_v11, 4  ;;  %vm303_vm15 = vmor %vm301_vm14, %vm302_vm12 }
  0xd4   : > { %v298_v19 = vsub.f32 1.0, %v297_v14  ;;  %v345_v20 = vrot.slane %v341_v15, 4 }
  0xd5   : > { %v358_v21 = vadd.f32 %v357_v17, %v343_v11  ;;  %v330_v22 = vadd.f32 %v813_v61, %v329_v16 }
  0xd6   : > { %v299_v25 = vmul.f32 %v815_v9, %v298_v19  ;;  %v346_v26 = vadd.f32 %v345_v20, %v341_v15 }
  0xd7   : > { %v359_v28 = vrot.slane %v358_v21, 2  ;;  %v334_v29 = vsel %vm333_vm11, %v813_v61, %v330_v22 }
  0xd8   : > { %v347_v30 = vrot.slane %v346_v26, 2  ;;  %v1161_v31 = vsel %vm336_vm13, %v338_v23, %v334_v29  ;;  %v300_v32 = vadd.f32 %v815_v9, %v299_v25 }
  0xd9   : > { %v360_v33 = vadd.f32 %v359_v28, %v358_v21  ;;  %v344_v34 = vand.u32 2147483647, %v1161_v31 }
  0xda   : > { %v348_v36 = vadd.f32 %v347_v30, %v346_v26  ;;  %v304_v37 = vsel %vm303_vm15, %v815_v9, %v300_v32 }
  0xdb   : > { %v361_v38 = vrot.slane %v360_v33, 1  ;;  %v363_v39 = vrot.slane %v344_v34, 4  ;;  %v1165_v40 = vsel %vm306_vm1, %v308_v35, %v304_v37 }
  0xdc   : > { %v349_v41 = vrot.slane %v348_v36, 1  ;;  %v342_v42 = vand.u32 2147483647, %v1165_v40 }
  0xdd   : > { %v362_v43 = vadd.f32 %v361_v38, %v360_v33  ;;  %v364_v44 = vadd.f32 %v363_v39, %v344_v34 }
  0xde   : > { %v350_v45 = vadd.f32 %v349_v41, %v348_v36  ;;  %v351_v46 = vrot.slane %v342_v42, 4 }
  0xdf   : > { %v371_v47 = vadd.f32 1e-08, %v362_v43  ;;  %v365_v48 = vrot.slane %v364_v44, 2 }
  0xe0   : > { %v369_v49 = vadd.f32 1e-08, %v350_v45  ;;  %v352_v50 = vadd.f32 %v351_v46, %v342_v42 }
  0xe1   : > { %816 = vrcp.f32 %v371_v47  ;;  %v366_v51 = vadd.f32 %v365_v48, %v364_v44  ;;  %v412_v1 = vand.u32 2147483647, %v371_v47  ;;  %v414_v3 = vand.u32 2147483648, %v371_v47 }
  0xe2   : > { %818 = vrcp.f32 %v369_v49  ;;  %v353_v52 = vrot.slane %v352_v50, 2  ;;  %v384_v9 = vand.u32 2147483648, %v369_v49  ;;  %v382_v13 = vand.u32 2147483647, %v369_v49 }
  0xe3   : > { %v367_v53 = vrot.slane %v366_v51, 1  ;;  %vm408_vm4 = vweird.f32 %v371_v47  ;;  %v415_v15 = vor.u32 1.1754944e-38, %v414_v3  ;;  %vm378_vm6 = vweird.f32 %v369_v49 }
  0xe4   : > { %v354_v54 = vadd.f32 %v353_v52, %v352_v50  ;;  %vm413_vm7 = vcmp.eq.f32.partialorder %v412_v1, 8.507059e+37  ;;  %v385_v18 = vor.u32 1.1754944e-38, %v384_v9  ;;  %vm383_vm9 = vcmp.eq.f32.partialorder %v382_v13, 8.507059e+37 }
  0xe5   : > { %v368_v56 = vadd.f32 %v367_v53, %v366_v51 }
  0xe6   : > { %v355_v57 = vrot.slane %v354_v54, 1 }
  0xe7   : > { %v817_v55 = vpop.eup %816  ;;  %v372_v61 = vadd.f32 1e-08, %v368_v56 }
  0xe8   : > { %v819_v58 = vpop.eup %818  ;;  %v404_v59 = vmul.f32 %v817_v55, %v371_v47  ;;  %v356_v62 = vadd.f32 %v355_v57, %v354_v54  ;;  %vm409_vm2 = vweird.f32 %v817_v55 }
  0xe9   : > { %v374_v60 = vmul.f32 %v819_v58, %v369_v49  ;;  %820 = vrcp.f32 %v372_v61  ;;  %vm379_vm3 = vweird.f32 %v819_v58  ;;  %vm410_vm5 = vmor %vm408_vm4, %vm409_vm2  ;;  %v429_v29 = vand.u32 2147483648, %v372_v61 }
  0xea   : > { %v405_v63 = vsub.f32 1.0, %v404_v59  ;;  %v370_v10 = vadd.f32 1e-08, %v356_v62  ;;  %vm380_vm8 = vmor %vm378_vm6, %vm379_vm3  ;;  %v427_v35 = vand.u32 2147483647, %v372_v61  ;;  %vm423_vm11 = vweird.f32 %v372_v61 }
  0xeb   : > { %v375_v4 = vsub.f32 1.0, %v374_v60  ;;  %v430_v39 = vor.u32 1.1754944e-38, %v429_v29 }
  0xec   : > { %v406_v8 = vmul.f32 %v817_v55, %v405_v63  ;;  %822 = vrcp.f32 %v370_v10  ;;  %v399_v41 = vand.u32 2147483648, %v370_v10  ;;  %vm428_vm14 = vcmp.eq.f32.partialorder %v427_v35, 8.507059e+37 }
  0xed   : > { %v376_v11 = vmul.f32 %v819_v58, %v375_v4  ;;  %vm393_vm15 = vweird.f32 %v370_v10 }
  0xee   : > { %v407_v14 = vadd.f32 %v817_v55, %v406_v8  ;;  %v400_v50 = vor.u32 1.1754944e-38, %v399_v41 }
  0xef   : > { %v377_v16 = vadd.f32 %v819_v58, %v376_v11  ;;  %v821_v19 = vpop.eup %820 }
  0xf0   : > { %v411_v17 = vsel %vm410_vm5, %v817_v55, %v407_v14  ;;  %v419_v24 = vmul.f32 %v821_v19, %v372_v61  ;;  %vm424_vm10 = vweird.f32 %v821_v19 }
  0xf1   : > { %v416_v20 = vsel %vm413_vm7, %v415_v15, %v411_v17  ;;  %v381_v21 = vsel %vm380_vm8, %v819_v58, %v377_v16  ;;  %vm425_vm12 = vmor %vm423_vm11, %vm424_vm10 }
  0xf2   : > { %v417_v22 = vmul.f32 %v416_v20, %v1152_v7  ;;  %v386_v23 = vsel %vm383_vm9, %v385_v18, %v381_v21  ;;  %v823_v26 = vpop.eup %822  ;;  %v420_v28 = vsub.f32 1.0, %v419_v24 }
  0xf3   : > { %v387_v25 = vmul.f32 %v386_v23, %v1155_v12  ;;  %v389_v32 = vmul.f32 %v823_v26, %v370_v10  ;;  %vm394_vm13 = vweird.f32 %v823_v26 }
  0xf4   : > { %v435_v27 = vmul.f32 %v417_v22, %v1133_v0  ;;  %v421_v34 = vmul.f32 %v821_v19, %v420_v28  ;;  %vm395_vm1 = vmor %vm393_vm15, %vm394_vm13 }
  0xf5   : > { %v433_v30 = vmul.f32 %v387_v25, %v1135_v2  ;;  %v390_v37 = vsub.f32 1.0, %v389_v32  ;;  %v397_v2 = vand.u32 2147483647, %v370_v10 }
  0xf6   : > { %v451_v33 = vsel %vm237_vm0, %v435_v27, 0.0  ;;  %v422_v12 = vadd.f32 %v821_v19, %v421_v34 }
  0xf7   : > { %v452_v36 = vrot.slane %v451_v33, 4  ;;  %v437_v7 = vsel %vm237_vm0, %v433_v30, 0.0  ;;  %v391_v42 = vmul.f32 %v823_v26, %v390_v37  ;;  %vm398_vm2 = vcmp.eq.f32.partialorder %v397_v2, 8.507059e+37 }
  0xf8   : > { %v438_v38 = vrot.slane %v437_v7, 4  ;;  %v426_v44 = vsel %vm425_vm12, %v821_v19, %v422_v12 }
  0xf9   : > { %v453_v0 = vadd.f32 %v452_v36, %v451_v33  ;;  %v431_v46 = vsel %vm428_vm14, %v430_v39, %v426_v44  ;;  %v392_v47 = vadd.f32 %v823_v26, %v391_v42 }
  0xfa   : > { %v439_v43 = vadd.f32 %v438_v38, %v437_v7  ;;  %v432_v49 = vmul.f32 %v431_v46, %v1161_v31 }
  0xfb   : > { %v454_v45 = vrot.slane %v453_v0, 2  ;;  %v396_v52 = vsel %vm395_vm1, %v823_v26, %v392_v47 }
  0xfc   : > { %v440_v48 = vrot.slane %v439_v43, 2  ;;  %v436_v54 = vmul.f32 %v432_v49, %v1139_v5  ;;  %v401_v55 = vsel %vm398_vm2, %v400_v50, %v396_v52  ;;  %vm593_vm2 = vcmask 253952  }
  0xfd   : > { %v455_v51 = vadd.f32 %v454_v45, %v453_v0  ;;  %v402_v57 = vmul.f32 %v401_v55, %v1165_v40 }
  0xfe   : > { %v441_v53 = vadd.f32 %v440_v48, %v439_v43  ;;  %v458_v59 = vsel %vm237_vm0, %v436_v54, 0.0 }
  0xff   : > { %v456_v56 = vrot.slane %v455_v51, 1  ;;  %v459_v61 = vrot.slane %v458_v59, 4  ;;  %v434_v31 = vmul.f32 %v402_v57, %v1141_v6 }
 0x100   : > { %v442_v58 = vrot.slane %v441_v53, 1 }
 0x101   : > { %v1178_v60 = vadd.f32 %v456_v56, %v455_v51  ;;  %v460_v1 = vadd.f32 %v459_v61, %v458_v59  ;;  %v444_v5 = vsel %vm237_vm0, %v434_v31, 0.0 }
 0x102   : > { %v1181_v62 = vadd.f32 %v442_v58, %v441_v53  ;;  %v445_v40 = vrot.slane %v444_v5, 4 }
 0x103   : > { %v467_v63 = vmul.f32 %v1178_v60, %v1178_v60  ;;  %v461_v8 = vrot.slane %v460_v1, 2 }
 0x104   : > { %v465_v3 = vmul.f32 %v1181_v62, %v1181_v62  ;;  %v446_v10 = vadd.f32 %v445_v40, %v444_v5 }
 0x105   : > { %v475_v4 = vsel %vm237_vm0, %v467_v63, 0.0  ;;  %v462_v6 = vadd.f32 %v461_v8, %v460_v1 }
 0x106   : > { %476 = vadd.xlane.f32.xlu0 %v475_v4  ;;  %v469_v9 = vsel %vm237_vm0, %v465_v3, 0.0  ;;  %v447_v11 = vrot.slane %v446_v10, 2 }
 0x107   : > { %470 = vadd.xlane.f32.xlu2 %v469_v9  ;;  %v463_v13 = vrot.slane %v462_v6, 1 }
 0x108   : > { %v448_v14 = vadd.f32 %v447_v11, %v446_v10 }
 0x109   : > { %v1190_v15 = vadd.f32 %v463_v13, %v462_v6 }
 0x10a   : > { %v449_v16 = vrot.slane %v448_v14, 1 }
 0x10b   : > { %v468_v17 = vmul.f32 %v1190_v15, %v1190_v15 }
 0x10c   : > { %v1194_v18 = vadd.f32 %v449_v16, %v448_v14 }
 0x10d   : > { %v478_v19 = vsel %vm237_vm0, %v468_v17, 0.0 }
 0x10e   : > { %479 = vadd.xlane.f32.xlu1 %v478_v19  ;;  %v466_v20 = vmul.f32 %v1194_v18, %v1194_v18 }
 0x110   : > { %v472_v21 = vsel %vm237_vm0, %v466_v20, 0.0 }
 0x111   : > { %473 = vadd.xlane.f32.xlu2 %v472_v21 }
 0x179   : > { %v477_v22 = vpop.xlane.xlu0 %476 }
 0x17a   : > { %v471_v23 = vpop.xlane.xlu2 %470  ;;  %824 = vrsqrt.f32 %v477_v22  ;;  %vm512_vm0 = vcmp.eq.f32.partialorder %v477_v22, inf  ;;  %vm514_vm3 = vcmp.eq.f32.partialorder %v477_v22, 0.0  ;;  %v515_v0 = vand.u32 2147483648, %v477_v22 }
 0x17b   : > { %826 = vrsqrt.f32 %v471_v23  ;;  %vm488_vm4 = vcmp.eq.f32.partialorder %v471_v23, inf  ;;  %v491_v2 = vand.u32 2147483648, %v471_v23  ;;  %vm490_vm5 = vcmp.eq.f32.partialorder %v471_v23, 0.0 }
 0x180   : > { %v825_v24 = vpop.eup %824 }
 0x181   : > { %v827_v25 = vpop.eup %826  ;;  %v506_v26 = vmul.f32 %v825_v24, %v477_v22  ;;  %v480_v29 = vpop.xlane.xlu1 %479 }
 0x182   : > { %v482_v27 = vmul.f32 %v827_v25, %v471_v23  ;;  %828 = vrsqrt.f32 %v480_v29  ;;  %vm524_vm6 = vcmp.eq.f32.partialorder %v480_v29, inf  ;;  %v527_v61 = vand.u32 2147483648, %v480_v29 }
 0x183   : > { %v507_v28 = vmul.f32 %v825_v24, %v506_v26  ;;  %vm526_vm7 = vcmp.eq.f32.partialorder %v480_v29, 0.0 }
 0x184   : > { %v483_v30 = vmul.f32 %v827_v25, %v482_v27  ;;  %v474_v34 = vpop.xlane.xlu2 %473 }
 0x185   : > { %v508_v32 = vmul.f32 0.5, %v507_v28  ;;  %830 = vrsqrt.f32 %v474_v34  ;;  %vm500_vm8 = vcmp.eq.f32.partialorder %v474_v34, inf  ;;  %v503_v4 = vand.u32 2147483648, %v474_v34 }
 0x186   : > { %v484_v33 = vmul.f32 0.5, %v483_v30  ;;  %vm502_vm9 = vcmp.eq.f32.partialorder %v474_v34, 0.0 }
 0x187   : > { %v509_v35 = vsub.f32 1.5, %v508_v32 }
 0x188   : > { %v485_v36 = vsub.f32 1.5, %v484_v33  ;;  %v829_v37 = vpop.eup %828 }
 0x189   : > { %v510_v7 = vmul.f32 %v825_v24, %v509_v35  ;;  %v518_v39 = vmul.f32 %v829_v37, %v480_v29 }
 0x18a   : > { %v486_v38 = vmul.f32 %v827_v25, %v485_v36 }
 0x18b   : > { %v511_v12 = vmul.f32 %v510_v7, %v477_v22  ;;  %v831_v42 = vpop.eup %830  ;;  %v519_v44 = vmul.f32 %v829_v37, %v518_v39 }
 0x18c   : > { %v487_v41 = vmul.f32 %v486_v38, %v471_v23  ;;  %v494_v47 = vmul.f32 %v831_v42, %v474_v34 }
 0x18d   : > { %v513_v43 = vsel %vm512_vm0, %v477_v22, %v511_v12  ;;  %v520_v50 = vmul.f32 0.5, %v519_v44 }
 0x18e   : > { %v489_v45 = vsel %vm488_vm4, %v471_v23, %v487_v41  ;;  %v516_v46 = vsel %vm514_vm3, %v515_v0, %v513_v43  ;;  %v495_v52 = vmul.f32 %v831_v42, %v494_v47 }
 0x18f   : > { %v492_v48 = vsel %vm490_vm5, %v491_v2, %v489_v45  ;;  %v531_v49 = vadd.f32 1e-08, %v516_v46  ;;  %v521_v53 = vsub.f32 1.5, %v520_v50 }
 0x190   : > { %v529_v51 = vadd.f32 1e-08, %v492_v48  ;;  %v496_v54 = vmul.f32 0.5, %v495_v52 }
 0x191   : > { %832 = vrcp.f32 %v531_v49  ;;  %v522_v55 = vmul.f32 %v829_v37, %v521_v53  ;;  %v574_v11 = vand.u32 2147483648, %v531_v49  ;;  %v572_v16 = vand.u32 2147483647, %v531_v49 }
 0x192   : > { %834 = vrcp.f32 %v529_v51  ;;  %v497_v56 = vsub.f32 1.5, %v496_v54  ;;  %v544_v20 = vand.u32 2147483648, %v529_v51  ;;  %vm568_vm11 = vweird.f32 %v531_v49 }
 0x193   : > { %v523_v57 = vmul.f32 %v522_v55, %v480_v29  ;;  %v542_v22 = vand.u32 2147483647, %v529_v51  ;;  %v575_v23 = vor.u32 1.1754944e-38, %v574_v11  ;;  %vm538_vm14 = vweird.f32 %v529_v51 }
 0x194   : > { %v498_v58 = vmul.f32 %v831_v42, %v497_v56  ;;  %vm573_vm15 = vcmp.eq.f32.partialorder %v572_v16, 8.507059e+37  ;;  %v545_v26 = vor.u32 1.1754944e-38, %v544_v20 }
 0x195   : > { %v525_v1 = vsel %vm524_vm6, %v480_v29, %v523_v57  ;;  %vm543_vm0 = vcmp.eq.f32.partialorder %v542_v22, 8.507059e+37 }
 0x196   : > { %v499_v5 = vmul.f32 %v498_v58, %v474_v34  ;;  %v528_v40 = vsel %vm526_vm7, %v527_v61, %v525_v1 }
 0x197   : > { %v833_v59 = vpop.eup %832  ;;  %v532_v9 = vadd.f32 1e-08, %v528_v40 }
 0x198   : > { %v835_v31 = vpop.eup %834  ;;  %v564_v63 = vmul.f32 %v833_v59, %v531_v49  ;;  %v501_v10 = vsel %vm500_vm8, %v474_v34, %v499_v5  ;;  %vm569_vm10 = vweird.f32 %v833_v59 }
 0x199   : > { %v534_v3 = vmul.f32 %v835_v31, %v529_v51  ;;  %v504_v13 = vsel %vm502_vm9, %v503_v4, %v501_v10  ;;  %836 = vrcp.f32 %v532_v9  ;;  %vm539_vm12 = vweird.f32 %v835_v31  ;;  %vm570_vm13 = vmor %vm568_vm11, %vm569_vm10 }
 0x19a   : > { %v565_v8 = vsub.f32 1.0, %v564_v63  ;;  %v530_v19 = vadd.f32 1e-08, %v504_v13  ;;  %vm540_vm1 = vmor %vm538_vm14, %vm539_vm12  ;;  %v589_v7 = vand.u32 2147483648, %v532_v9  ;;  %vm583_vm4 = vweird.f32 %v532_v9 }
 0x19b   : > { %v535_v6 = vsub.f32 1.0, %v534_v3 }
 0x19c   : > { %v566_v14 = vmul.f32 %v833_v59, %v565_v8  ;;  %838 = vrcp.f32 %v530_v19  ;;  %v590_v41 = vor.u32 1.1754944e-38, %v589_v7  ;;  %v557_v42 = vand.u32 2147483647, %v530_v19 }
 0x19d   : > { %v536_v17 = vmul.f32 %v835_v31, %v535_v6  ;;  %vm553_vm8 = vweird.f32 %v530_v19 }
 0x19e   : > { %v567_v21 = vadd.f32 %v833_v59, %v566_v14  ;;  %vm558_vm10 = vcmp.eq.f32.partialorder %v557_v42, 8.507059e+37 }
 0x19f   : > { %v537_v24 = vadd.f32 %v835_v31, %v536_v17  ;;  %v837_v28 = vpop.eup %836 }
 0x1a0   : > { %v571_v25 = vsel %vm570_vm13, %v833_v59, %v567_v21  ;;  %v579_v32 = vmul.f32 %v837_v28, %v532_v9  ;;  %vm584_vm3 = vweird.f32 %v837_v28 }
 0x1a1   : > { %v576_v27 = vsel %vm573_vm15, %v575_v23, %v571_v25  ;;  %v541_v29 = vsel %vm540_vm1, %v835_v31, %v537_v24  ;;  %vm585_vm5 = vmor %vm583_vm4, %vm584_vm3 }
 0x1a2   : > { %v577_v30 = vmul.f32 %v576_v27, %v1178_v60  ;;  %v546_v33 = vsel %vm543_vm0, %v545_v26, %v541_v29  ;;  %v839_v35 = vpop.eup %838  ;;  %v580_v36 = vsub.f32 1.0, %v579_v32  ;;  %v587_v60 = vand.u32 2147483647, %v532_v9 }
 0x1a3   : > { %v547_v34 = vmul.f32 %v546_v33, %v1181_v62  ;;  %v549_v37 = vmul.f32 %v839_v35, %v530_v19  ;;  %v559_v62 = vand.u32 2147483648, %v530_v19  ;;  %vm554_vm6 = vweird.f32 %v839_v35 }
 0x1a4   : > { %596 = vst.msk [vmem:[%s1203_s5 + $0x2] sm:$0x1] %vm593_vm2, %v577_v30  ;;  %v581_v38 = vmul.f32 %v837_v28, %v580_v36  ;;  %vm588_vm7 = vcmp.eq.f32.partialorder %v587_v60, 8.507059e+37  ;;  %vm555_vm9 = vmor %vm553_vm8, %vm554_vm6 }
 0x1a5   : > { %594 = vst.msk [vmem:[%s1203_s5] sm:$0x1] %vm593_vm2, %v547_v34  ;;  %v550_v12 = vsub.f32 1.0, %v549_v37  ;;  %v560_v45 = vor.u32 1.1754944e-38, %v559_v62 }
 0x1a6   : > { %v582_v39 = vadd.f32 %v837_v28, %v581_v38 }
 0x1a7   : > { %v551_v0 = vmul.f32 %v839_v35, %v550_v12 }
 0x1a8   : > { %v586_v2 = vsel %vm585_vm5, %v837_v28, %v582_v39 }
 0x1a9   : > { %v552_v43 = vadd.f32 %v839_v35, %v551_v0  ;;  %v591_v44 = vsel %vm588_vm7, %v590_v41, %v586_v2 }
 0x1aa   : > { %v592_v46 = vmul.f32 %v591_v44, %v1190_v15 }
 0x1ab   : > { %v556_v47 = vsel %vm555_vm9, %v839_v35, %v552_v43 }
 0x1ac   : > { %v561_v48 = vsel %vm558_vm10, %v560_v45, %v556_v47  ;;  %597 = vst.msk [vmem:[%s1203_s5 + $0x3] sm:$0x1] %vm593_vm2, %v592_v46 }
 0x1ad   : > { %v562_v49 = vmul.f32 %v561_v48, %v1194_v18 }
 0x1af   : > { %595 = vst.msk [vmem:[%s1203_s5 + $0x1] sm:$0x1] %vm593_vm2, %v562_v49 }
 0x1b0   : > { %942 = shalt.err (!%p939_p8)
}
 0x1b1   : > { %s995_s20 = smov 16   ;;  %s996_s26 = smov 1  }
 0x1b2   : > { %738 = dma.vmem_to_hbm [thread:$0]  (%p1069_p11), %s611_s16, 64, %s613_s9, %s599_s19, %s995_s20, %s995_s20, %s996_s26  }
 0x1b3 PF: > { %s627_s8 = sand.u32 1, %s977_s12   ;;  %p1259_p9 = scmp.ge.s32.totalorder %s989_s15, 2 }
 0x1b4   : > { %s628_s30 = scalar_lea.sflag [#allocation4], %s627_s8 }
 0x1b5   : > { %p752_p10 = pnand %p1259_p9, %p1073_p12 }
 0x1b7   : > { %p753_p1 = pneg %p752_p10 }
 0x1b9   : > { %972 = dma.done.wait (%p753_p1), %s628_s30, 64  }
 0x1ba   : > { %974 = vsyncadd (%p753_p1), %s628_s30, 4294967232  ;;  %p18_p2 = scmp.ge.s32.totalorder %s1042_s18, 4   ;;  %s1260_s12 = smov %s981_s13 }
 0x1bb   : > { %s1261_s13 = smov %s985_s14  ;;  %s1262_s14 = smov %s1054_s21 }
 0x1bc   : > { %s1263_s15 = smov %s1042_s18  ;;  %20 = sbr.rel (!%p18_p2) target bundleno = 7 (0x7), region = 86 }
 0x1c1   :  { %634 = vsyncpa [#allocation3], 1 }
 0x1c2   :  { %636 = vsyncpa [#allocation3 + $0x1], 1 }
 0x1c3   :  { %637 = vsyncpa [#allocation7], 1 }
 0x1c4   :  { %638 = vsyncpa [#allocation4], 1 }
 0x1c5   :  { %640 = vsyncpa [#allocation4 + $0x1], 1 }
 0x1c6   :  { %641 = vsyncpa [#allocation5], 1 }
 0x1c7   :  { %643 = vsyncpa [#allocation5 + $0x1], 1 }

</bundles_post_ra>
